<compile_context>
chip_gen: v6e
topology: v6e:2x2x1
jax: 0.10.0
libtpu: 0.0.40
codegen_flags: <defaults>
</compile_context>

<pallas_src>
import functools

import jax
import jax.numpy as jnp
from jax.experimental import pallas as pl
from jax.experimental.pallas import tpu as pltpu

# PIM API enums (mirroring pim_api constants used by the PyTorch wrapper)
I_X_W = 0
W_X_I = 1
ACT_NONE = 0
ACT_RELU = 1

# TODO(synk): PIM device buffer management (PimDesc / PimCopyMemory / fp16 PIM
# execution path) has no Pallas equivalent; only the math is reproduced here.


def _round_up(x, m):
    return ((x + m - 1) // m) * m


def _make_kernel(apply_relu, has_bias, acc_in_out):
    """Tiled matmul with fused bias + optional ReLU epilogue."""

    def kernel(*refs):
        if has_bias:
            x_ref, w_ref, b_ref, o_ref, *rest = refs
        else:
            x_ref, w_ref, o_ref, *rest = refs
            b_ref = None
        # f32 outputs accumulate directly in the resident output block.
        acc_ref = o_ref if acc_in_out else rest[0]

        k = pl.program_id(2)

        @pl.when(k == 0)
        def _init():
            acc_ref[...] = jnp.zeros_like(acc_ref)

        acc_ref[...] += jnp.dot(
            x_ref[...], w_ref[...], preferred_element_type=jnp.float32
        )

        if has_bias or apply_relu or (not acc_in_out):
            @pl.when(k == pl.num_programs(2) - 1)
            def _finalize():
                out = acc_ref[...].astype(jnp.float32)
                if has_bias:
                    out = out + b_ref[...]  # (1, tn) f32, broadcasts over tm
                if apply_relu:
                    out = jnp.maximum(out, 0.0)
                o_ref[...] = out.astype(o_ref.dtype)

    return kernel


@functools.partial(jax.jit, static_argnames=("apply_relu", "tm", "tn", "tk"))
def _pim_gemm_call(x, w, bias, *, apply_relu, tm, tn, tk):
    M, K = x.shape
    _, N = w.shape
    has_bias = bias is not None
    out_dtype = x.dtype
    acc_in_out = out_dtype == jnp.float32

    # Pad to tile multiples (zeros are exact for the matmul reduction).
    Mp = _round_up(M, tm)
    Np = _round_up(N, tn)
    Kp = _round_up(K, tk)
    xp = jnp.pad(x, ((0, Mp - M), (0, Kp - K)))
    wp = jnp.pad(w, ((0, Kp - K), (0, Np - N)))

    in_specs = [
        pl.BlockSpec((tm, tk), lambda i, j, k: (i, k)),   # inputs tile
        pl.BlockSpec((tk, tn), lambda i, j, k: (k, j)),   # weight tile
    ]
    args = [xp, wp]
    if has_bias:
        b2d = jnp.reshape(bias, (1, N)).astype(jnp.float32)  # keep f32 precision
        b2d = jnp.pad(b2d, ((0, 0), (0, Np - N)))
        in_specs.append(pl.BlockSpec((1, tn), lambda i, j, k: (0, j)))
        args.append(b2d)

    scratch_shapes = [] if acc_in_out else [pltpu.VMEM((tm, tn), jnp.float32)]

    # Explicit VMEM budget: double-buffered tiles + accumulator, with margin,
    # capped at 48 MiB so it stays safe on v7x (64 MiB physical VMEM).
    xb = jnp.dtype(x.dtype).itemsize
    wb = jnp.dtype(w.dtype).itemsize
    ob = jnp.dtype(out_dtype).itemsize
    est = 2 * (tm * tk * xb + tk * tn * wb) + 2 * tm * tn * ob
    if has_bias:
        est += 2 * tn * 4
    if not acc_in_out:
        est += tm * tn * 4
    vmem_limit = int(min(max(2 * est, 16 * 1024 * 1024), 48 * 1024 * 1024))

    out = pl.pallas_call(
        _make_kernel(apply_relu, has_bias, acc_in_out),
        out_shape=jax.ShapeDtypeStruct((Mp, Np), out_dtype),
        grid_spec=pltpu.PrefetchScalarGridSpec(
            num_scalar_prefetch=0,
            grid=(Mp // tm, Np // tn, Kp // tk),
            in_specs=in_specs,
            out_specs=pl.BlockSpec((tm, tn), lambda i, j, k: (i, j)),
            scratch_shapes=scratch_shapes,
        ),
        compiler_params=pltpu.CompilerParams(
            dimension_semantics=("parallel", "parallel", "arbitrary"),
            vmem_limit_bytes=vmem_limit,
        ),
    )(*args)

    return out[:M, :N]


def pim_gemm(inputs, weight, bias=None, act=ACT_RELU, gemm_order=I_X_W,
             block=True, *, tm=256, tn=512, tk=512):
    """Pallas TPU implementation of PimGemm.forward."""
    if gemm_order == W_X_I:
        # W_X_I computes weight @ inputs: swap operands and run a plain GEMM.
        inputs, weight = weight, inputs

    M, K = inputs.shape
    K2, N = weight.shape
    assert K == K2, "inner dimensions must match"

    # Cap tiles at the (aligned) problem size; keep MXU/lane alignment
    # (sublane multiple of 8 for M, lane multiple of 128 for N and K).
    tm = min(tm, _round_up(M, 8))
    tn = min(tn, _round_up(N, 128))
    tk = min(tk, _round_up(K, 128))

    out = _pim_gemm_call(
        inputs, weight, bias,
        apply_relu=(act == ACT_RELU), tm=tm, tn=tn, tk=tk,
    )

    if block:
        out = jax.block_until_ready(out)
    return out


if __name__ == "__main__":
    key = jax.random.PRNGKey(0)
    kx, kw, kb, k2, k3 = jax.random.split(key, 5)

    # --- I_X_W path with bias + ReLU.  Small GEMM-layer shapes. ---
    M, K, N = 16, 64, 256
    x = jax.random.normal(kx, (M, K), dtype=jnp.float32)
    w = jax.random.normal(kw, (K, N), dtype=jnp.float32) * 0.1
    b = jax.random.normal(kb, (N,), dtype=jnp.float32)

    out = pim_gemm(x, w, b, act=ACT_RELU, gemm_order=I_X_W, block=True)
    ref = jnp.maximum(x @ w + b, 0.0)
    assert out.shape == (M, N)
    assert jnp.allclose(out, ref, atol=1e-4, rtol=1e-4)

    # --- W_X_I path: out = weight @ inputs, no bias, no activation,
    #     deliberately non-(8,128)-aligned shapes to exercise padding. ---
    w2 = jax.random.normal(k2, (40, 32), dtype=jnp.float32) * 0.1   # weight
    x2 = jax.random.normal(k3, (32, 24), dtype=jnp.float32)         # inputs
    out2 = pim_gemm(x2, w2, None, act=ACT_NONE, gemm_order=W_X_I, block=True)
    ref2 = w2 @ x2
    assert out2.shape == (40, 24)
    assert jnp.allclose(out2, ref2, atol=1e-4, rtol=1e-4)

    jax.block_until_ready((out, out2))
    print("KERNEL_OK")
</pallas_src>

<mosaic_0001>
module attributes {stable_mosaic.version = 11 : i64} {
  func.func @kernel(%arg0: i32, %arg1: i32, %arg2: i32, %arg3: memref<16x128xf32, #tpu.memory_space<vmem>>, %arg4: memref<128x256xf32, #tpu.memory_space<vmem>>, %arg5: memref<1x256xf32, #tpu.memory_space<vmem>>, %arg6: memref<16x256xf32, #tpu.memory_space<vmem>>) attributes {dimension_semantics = [#tpu.dimension_semantics<parallel>, #tpu.dimension_semantics<parallel>, #tpu.dimension_semantics<arbitrary>], iteration_bounds = array<i64: 1, 1, 1>, scalar_prefetch = 0 : i64, scratch_operands = 0 : i64, tpu.core_type = #tpu.core_type<tc>, window_params = [{transform_indices = @transform_0, window_bounds = array<i64: 16, 128>}, {transform_indices = @transform_1, window_bounds = array<i64: 128, 256>}, {transform_indices = @transform_2, window_bounds = array<i64: 1, 256>}, {transform_indices = @transform_3, window_bounds = array<i64: 16, 256>}]} {
    %c0_i32 = arith.constant 0 : i32
    %0 = arith.cmpi eq, %arg2, %c0_i32 : i32
    %1 = arith.extui %0 : i1 to i32
    %c0_i32_0 = arith.constant 0 : i32
    %2 = arith.cmpi ne, %1, %c0_i32_0 : i32
    scf.if %2 {
      %cst_10 = arith.constant 0.000000e+00 : f32
      %12 = vector.broadcast %cst_10 : f32 to vector<16x256xf32>
      %c0_11 = arith.constant 0 : index
      %c0_12 = arith.constant 0 : index
      %13 = vector.load %arg6[%c0_11, %c0_12] : memref<16x256xf32, #tpu.memory_space<vmem>>, vector<16x256xf32>
      tpu.vector_store %arg6[%c0_11, %c0_12], %12 {strides = array<i32>} : memref<16x256xf32, #tpu.memory_space<vmem>>, vector<16x256xf32>,
    } else {
    }
    %c0 = arith.constant 0 : index
    %c0_1 = arith.constant 0 : index
    %3 = vector.load %arg6[%c0, %c0_1] : memref<16x256xf32, #tpu.memory_space<vmem>>, vector<16x256xf32>
    %c0_2 = arith.constant 0 : index
    %c0_3 = arith.constant 0 : index
    %4 = vector.load %arg3[%c0_2, %c0_3] : memref<16x128xf32, #tpu.memory_space<vmem>>, vector<16x128xf32>
    %c0_4 = arith.constant 0 : index
    %c0_5 = arith.constant 0 : index
    %5 = vector.load %arg4[%c0_4, %c0_5] : memref<128x256xf32, #tpu.memory_space<vmem>>, vector<128x256xf32>
    %cst = arith.constant dense<0.000000e+00> : vector<16x256xf32>
    %6 = tpu.matmul %4, %5, %cst {dimension_numbers = #tpu.dot_dimension_numbers<[1], [0], [0], [1], [0, 0, 1, 1], [], []>} : vector<16x128xf32>, vector<128x256xf32>, vector<16x256xf32> -> vector<16x256xf32>
    %7 = arith.addf %3, %6 : vector<16x256xf32>
    %c0_6 = arith.constant 0 : index
    %c0_7 = arith.constant 0 : index
    %8 = vector.load %arg6[%c0_6, %c0_7] : memref<16x256xf32, #tpu.memory_space<vmem>>, vector<16x256xf32>
    tpu.vector_store %arg6[%c0_6, %c0_7], %7 {strides = array<i32>} : memref<16x256xf32, #tpu.memory_space<vmem>>, vector<16x256xf32>,
    %c0_i32_8 = arith.constant 0 : i32
    %9 = arith.cmpi eq, %arg2, %c0_i32_8 : i32
    %10 = arith.extui %9 : i1 to i32
    %c0_i32_9 = arith.constant 0 : i32
    %11 = arith.cmpi ne, %10, %c0_i32_9 : i32
    scf.if %11 {
      %c0_10 = arith.constant 0 : index
      %c0_11 = arith.constant 0 : index
      %12 = vector.load %arg6[%c0_10, %c0_11] : memref<16x256xf32, #tpu.memory_space<vmem>>, vector<16x256xf32>
      %c0_12 = arith.constant 0 : index
      %c0_13 = arith.constant 0 : index
      %13 = vector.load %arg5[%c0_12, %c0_13] : memref<1x256xf32, #tpu.memory_space<vmem>>, vector<1x256xf32>
      %14 = vector.broadcast %13 : vector<1x256xf32> to vector<16x256xf32>
      %15 = arith.addf %12, %14 : vector<16x256xf32>
      %cst_14 = arith.constant 0.000000e+00 : f32
      %16 = vector.broadcast %cst_14 : f32 to vector<16x256xf32>
      %17 = arith.maximumf %15, %16 : vector<16x256xf32>
      %c0_15 = arith.constant 0 : index
      %c0_16 = arith.constant 0 : index
      %18 = vector.load %arg6[%c0_15, %c0_16] : memref<16x256xf32, #tpu.memory_space<vmem>>, vector<16x256xf32>
      tpu.vector_store %arg6[%c0_15, %c0_16], %17 {strides = array<i32>} : memref<16x256xf32, #tpu.memory_space<vmem>>, vector<16x256xf32>,
    } else {
    }
    return
  }
  func.func @transform_0(%arg0: i32, %arg1: i32, %arg2: i32) -> (i32, i32) {
    %c0_i32 = arith.constant 0 : i32
    return %arg0, %arg2 : i32, i32
  }
  func.func @transform_1(%arg0: i32, %arg1: i32, %arg2: i32) -> (i32, i32) {
    %c0_i32 = arith.constant 0 : i32
    return %arg2, %arg1 : i32, i32
  }
  func.func @transform_2(%arg0: i32, %arg1: i32, %arg2: i32) -> (i32, i32) {
    %c0_i32 = arith.constant 0 : i32
    %c0_i32_0 = arith.constant 0 : i32
    return %c0_i32, %arg1 : i32, i32
  }
  func.func @transform_3(%arg0: i32, %arg1: i32, %arg2: i32) -> (i32, i32) {
    %c0_i32 = arith.constant 0 : i32
    return %arg0, %arg1 : i32, i32
  }
}

</mosaic_0001>

<bundles_post_ra>
// kernel: _pim_gemm_call.1
= control target key start
LH: loop header
LB: loop body
LE: loop exit
PB: predicated region body
PF: predicated region fallthrough
CT: control target
= control target key end

     0   :  { %s383_s0 = inlined_call_operand.vmem [shape: f32[16,128], index: 0, kind: input, shape index: {}]   ;;  %s384_s1 = inlined_call_operand.vmem [shape: f32[128,256], index: 1, kind: input, shape index: {}]   ;;  %s385_s2 = inlined_call_operand.vmem [shape: f32[1,256], index: 2, kind: input, shape index: {}]   ;;  %s386_s3 = inlined_call_operand.hbm [shape: f32[16,256], index: 3, kind: output, shape index: {}]  }
   0x1   :  { %v60_v0 = vld [vmem:[%s384_s1 + $0xf8] sm:$0xff]  ;;  %v59_v1 = vld [vmem:[%s384_s1 + $0xf0] sm:$0xff]  ;;  %v58_v2 = vld [vmem:[%s384_s1 + $0xe8] sm:$0xff] }
   0x2   :  { %61 = vmatprep.subr.mxu0 %v60_v0  ;;  %193 = vmatprep.subr.mxu1 %v60_v0  ;;  %v57_v3 = vld [vmem:[%s384_s1 + $0xe0] sm:$0xff]  ;;  %v56_v4 = vld [vmem:[%s384_s1 + $0xd8] sm:$0xff]  ;;  %v55_v5 = vld [vmem:[%s384_s1 + $0xd0] sm:$0xff] }
   0x3   :  { %62 = vmatpush1.msra.mxu0 %v59_v1  ;;  %209 = vmatpush1.msra.mxu1 %v59_v1  ;;  %v54_v6 = vld [vmem:[%s384_s1 + $0xc8] sm:$0xff]  ;;  %v53_v7 = vld [vmem:[%s384_s1 + $0xc0] sm:$0xff]  ;;  %v52_v8 = vld [vmem:[%s384_s1 + $0xb8] sm:$0xff] }
   0x4   :  { %63 = vmatprep.subr.mxu0 %v58_v2  ;;  %194 = vmatprep.subr.mxu1 %v58_v2  ;;  %v51_v9 = vld [vmem:[%s384_s1 + $0xb0] sm:$0xff]  ;;  %v50_v10 = vld [vmem:[%s384_s1 + $0xa8] sm:$0xff]  ;;  %v49_v11 = vld [vmem:[%s384_s1 + $0xa0] sm:$0xff] }
   0x5   :  { %64 = vmatpush1.msra.mxu0 %v57_v3  ;;  %210 = vmatpush1.msra.mxu1 %v57_v3  ;;  %v48_v12 = vld [vmem:[%s384_s1 + $0x98] sm:$0xff]  ;;  %v47_v13 = vld [vmem:[%s384_s1 + $0x90] sm:$0xff] }
   0x6   :  { %65 = vmatprep.subr.mxu0 %v56_v4  ;;  %195 = vmatprep.subr.mxu1 %v56_v4 }
   0x7   :  { %66 = vmatpush1.msra.mxu0 %v55_v5  ;;  %211 = vmatpush1.msra.mxu1 %v55_v5 }
   0x8   :  { %67 = vmatprep.subr.mxu0 %v54_v6  ;;  %196 = vmatprep.subr.mxu1 %v54_v6 }
   0x9   :  { %68 = vmatpush1.msra.mxu0 %v53_v7  ;;  %212 = vmatpush1.msra.mxu1 %v53_v7 }
   0xa   :  { %69 = vmatprep.subr.mxu0 %v52_v8  ;;  %197 = vmatprep.subr.mxu1 %v52_v8 }
   0xb   :  { %70 = vmatpush1.msra.mxu0 %v51_v9  ;;  %213 = vmatpush1.msra.mxu1 %v51_v9 }
   0xc   :  { %71 = vmatprep.subr.mxu0 %v50_v10  ;;  %198 = vmatprep.subr.mxu1 %v50_v10 }
   0xd   :  { %8 = vsyncpa [#allocation3], 0  ;;  %72 = vmatpush1.msra.mxu0 %v49_v11  ;;  %214 = vmatpush1.msra.mxu1 %v49_v11  ;;  %v46_v14 = vld [vmem:[%s384_s1 + $0x88] sm:$0xff]  ;;  %v45_v15 = vld [vmem:[%s384_s1 + $0x80] sm:$0xff]  ;;  %v251_v34 = vmov 0.0   ;;  %v155_v35 = vlaneseq }
   0xe   :  { %73 = vmatprep.subr.mxu0 %v48_v12  ;;  %199 = vmatprep.subr.mxu1 %v48_v12  ;;  %v44_v16 = vld [vmem:[%s384_s1 + $0x78] sm:$0xff]  ;;  %v43_v17 = vld [vmem:[%s384_s1 + $0x70] sm:$0xff]  ;;  %v42_v18 = vld [vmem:[%s384_s1 + $0x68] sm:$0xff] }
   0xf   :  { %74 = vmatpush1.msra.mxu0 %v47_v13  ;;  %215 = vmatpush1.msra.mxu1 %v47_v13  ;;  %v41_v19 = vld [vmem:[%s384_s1 + $0x60] sm:$0xff]  ;;  %v40_v20 = vld [vmem:[%s384_s1 + $0x58] sm:$0xff]  ;;  %v39_v21 = vld [vmem:[%s384_s1 + $0x50] sm:$0xff]  ;;  %v156_v36 = vshrl.u32 %v155_v35, 7 }
  0x10   :  { %75 = vmatprep.subr.mxu0 %v46_v14  ;;  %200 = vmatprep.subr.mxu1 %v46_v14  ;;  %v38_v22 = vld [vmem:[%s384_s1 + $0x48] sm:$0xff]  ;;  %v37_v23 = vld [vmem:[%s384_s1 + $0x40] sm:$0xff]  ;;  %v36_v24 = vld [vmem:[%s384_s1 + $0x38] sm:$0xff] }
  0x11   :  { %76 = vmatpush1.msra.mxu0 %v45_v15  ;;  %216 = vmatpush1.msra.mxu1 %v45_v15  ;;  %v35_v25 = vld [vmem:[%s384_s1 + $0x30] sm:$0xff]  ;;  %v34_v26 = vld [vmem:[%s384_s1 + $0x28] sm:$0xff]  ;;  %v33_v27 = vld [vmem:[%s384_s1 + $0x20] sm:$0xff]  ;;  %v157_v37 = vsub.s32 0, %v156_v36  ;;  %v161_v39 = vsub.s32 1, %v156_v36 }
  0x12   :  { %77 = vmatprep.subr.mxu0 %v44_v16  ;;  %201 = vmatprep.subr.mxu1 %v44_v16  ;;  %v32_v28 = vld [vmem:[%s384_s1 + $0x18] sm:$0xff]  ;;  %v31_v29 = vld [vmem:[%s384_s1 + $0x10] sm:$0xff]  ;;  %v30_v30 = vld [vmem:[%s384_s1 + $0x8] sm:$0xff] }
  0x13   :  { %78 = vmatpush1.msra.mxu0 %v43_v17  ;;  %217 = vmatpush1.msra.mxu1 %v43_v17  ;;  %v29_v31 = vld [vmem:[%s384_s1] sm:$0xff]  ;;  %v28_v33 = vld [vmem:[%s383_s0 + $0x8] sm:$0xff] }
  0x14   :  { %79 = vmatprep.subr.mxu0 %v42_v18  ;;  %202 = vmatprep.subr.mxu1 %v42_v18  ;;  %v27_v32 = vld [vmem:[%s383_s0] sm:$0xff]  ;;  %s252_s0 = smov [#allocation2]  }
  0x15   :  { %80 = vmatpush1.msra.mxu0 %v41_v19  ;;  %218 = vmatpush1.msra.mxu1 %v41_v19  ;;  %v153_v38 = vld [vmem:[%s385_s2] sm:$0x3]  ;;  %s182_s27 = sshll.u32 %s252_s0, 4  ;;  %s183_s27 = int_to_ptr.vmem [resolvable:$true] %s182_s27 }
  0x16   :  { %81 = vmatprep.subr.mxu0 %v40_v20  ;;  %203 = vmatprep.subr.mxu1 %v40_v20  ;;  %v158_v40 = vrot.slane %v153_v38, %v157_v37  ;;  %v162_v43 = vrot.slane %v153_v38, %v161_v39  ;;  %s229_s2 = scalar_lea.vmem %s183_s27, 512  ;;  %p234_p1 = scmp.lt.s32.totalorder %s183_s27, %s183_s27 }
  0x17   :  { %82 = vmatpush1.msra.mxu0 %v39_v21  ;;  %219 = vmatpush1.msra.mxu1 %v39_v21  ;;  %p230_p0 = scmp.ne.s32.totalorder %s183_s27, %s229_s2  ;;  %p235_p2 = scmp.lt.s32.totalorder %s229_s2, %s229_s2 }
  0x18   :  { %83 = vmatprep.subr.mxu0 %v38_v22  ;;  %204 = vmatprep.subr.mxu1 %v38_v22 }
  0x19   :  { %84 = vmatpush1.msra.mxu0 %v37_v23  ;;  %220 = vmatpush1.msra.mxu1 %v37_v23  ;;  %p236_p3 = por %p235_p2, %p234_p1 }
  0x1a   :  { %85 = vmatprep.subr.mxu0 %v36_v24  ;;  %205 = vmatprep.subr.mxu1 %v36_v24 }
  0x1b   :  { %86 = vmatpush1.msra.mxu0 %v35_v25  ;;  %221 = vmatpush1.msra.mxu1 %v35_v25  ;;  %p237_p4 = pnand %p236_p3, %p230_p0 }
  0x1c   :  { %87 = vmatprep.subr.mxu0 %v34_v26  ;;  %206 = vmatprep.subr.mxu1 %v34_v26 }
  0x1d   :  { %88 = vmatpush1.msra.mxu0 %v33_v27  ;;  %222 = vmatpush1.msra.mxu1 %v33_v27 }
  0x1e   :  { %89 = vmatprep.subr.mxu0 %v32_v28  ;;  %207 = vmatprep.subr.mxu1 %v32_v28 }
  0x1f   :  { %90 = vmatpush1.msra.mxu0 %v31_v29  ;;  %223 = vmatpush1.msra.mxu1 %v31_v29 }
  0x20   :  { %91 = vmatprep.subr.mxu0 %v30_v30  ;;  %208 = vmatprep.subr.mxu1 %v30_v30 }
  0x21   :  { %92 = vmatpush1.msra.mxu0 %v29_v31  ;;  %224 = vmatpush1.msra.mxu1 %v29_v31 }
  0x22   :  { %125 = vmatprep.mubr.f32.mxu0 %v251_v34  ;;  %131 = vmatprep.mubr.f32.mxu1 %v251_v34 }
  0x23   :  { %126 = vmatmul.mubr.f32.vlgmr.msra.gmra.mxu0 %v27_v32  ;;  %132 = vmatmul.mubr.f32.vlgmr.msra.gmra.mxu1 %v28_v33 }
  0xe3   :  { %v127_v41 = vpop.f32.mrf.mxu0  ;;  %v133_v42 = vpop.f32.mrf.mxu1 }
  0xe4   :  { %v165_v46 = vadd.f32 %v158_v40, %v127_v41  ;;  %v167_v47 = vadd.f32 %v158_v40, %v133_v42 }
  0xe5   :  { %v129_v44 = vpop.f32.mrf.mxu0  ;;  %v135_v45 = vpop.f32.mrf.mxu1 }
  0xe6   :  { %v169_v48 = vmax.f32 %v165_v46, 0.0  ;;  %v171_v49 = vmax.f32 %v167_v47, 0.0  ;;  %v166_v50 = vadd.f32 %v162_v43, %v129_v44  ;;  %v168_v51 = vadd.f32 %v162_v43, %v135_v45 }
  0xe8   :  { %173 = vst [vmem:[#allocation2] sm:$0xff] %v169_v48  ;;  %175 = vst [vmem:[#allocation2 + $0x10] sm:$0xff] %v171_v49  ;;  %v170_v52 = vmax.f32 %v166_v50, 0.0  ;;  %v172_v53 = vmax.f32 %v168_v51, 0.0 }
  0xea   :  { %174 = vst [vmem:[#allocation2 + $0x8] sm:$0xff] %v170_v52  ;;  %176 = vst [vmem:[#allocation2 + $0x18] sm:$0xff] %v172_v53 }
  0xeb   :  { %240 = shalt.err (!%p237_p4)
}
  0xec   :  { %s253_s28 = smov 256   ;;  %s254_s29 = smov 16  }
  0xed   :  { %188 = dma.vmem_to_hbm [thread:$0]  %s183_s27, 512, %s386_s3, [#allocation3], %s253_s28, %s253_s28, %s254_s29  }
  0xee   :  { %249 = dma.done.wait [#allocation3], 512  }
  0xef   :  { %250 = vsyncadd [#allocation3], 4294966784 }
  0xf0   :  { %192 = vsyncpa [#allocation3], 1 }

</bundles_post_ra>
